<compile_context>
chip_gen: v5e
topology: v5e:2x2
jax: 0.10.0
libtpu: 0.0.40
codegen_flags: <defaults>
</compile_context>

<pallas_src>
import math

import jax
import jax.numpy as jnp
from jax.experimental import pallas as pl
from jax.experimental.pallas import tpu as pltpu

# ------------------------- problem configuration -------------------------
N        = 2       # batch
C_IN     = 4       # n_inputs
C_OUT    = 8       # n_outputs
L        = 16      # sequence length
K        = 3       # kernel_size (odd -> 'same' output length, like PyTorch pad=K//2)
PAD      = K // 2
NL       = N * L                                   # fused lane axis (valid width)
NL_PAD   = max(128, ((NL + 127) // 128) * 128)     # lane-dense width (mult. of 128)
USE_RELU = True
BN_EPS   = 1e-5    # nn.BatchNorm1d default


def conv_block_kernel(x_ref, w_ref, gamma_ref, beta_ref, o_ref, xpad_ref, xstack_ref):
    """x_ref: (C_IN, N*L)         w_ref: (C_OUT, K*C_IN)  [row = k*C_IN + c]
       gamma_ref/beta_ref: (C_OUT, 1)                     o_ref: (C_OUT, NL_PAD)
       xpad_ref:   VMEM (C_IN, N*L + 2*PAD)  scratch: conv-boundary zero-padded x
       xstack_ref: VMEM (K*C_IN, NL_PAD)     scratch: lane-dense im2col stack"""
    # ---- in-kernel zero padding of the conv boundary (no padded HBM copy) ----
    xpad_ref[...] = jnp.zeros_like(xpad_ref)
    xpad_ref[:, pl.ds(PAD, NL)] = x_ref[...]

    # Position within each length-L segment of the fused (N*L) lane axis; used to
    # zero taps that would otherwise read across a batch boundary.
    lpos = jax.lax.broadcasted_iota(jnp.int32, (C_IN, NL), 1) % L

    # ---- build the im2col stack: row (k*C_IN + c) = shifted / masked x[c, :] ----
    # Columns [NL, NL_PAD) stay exactly zero, so they contribute nothing to the
    # MXU matmul or to the BatchNorm sums below.
    xstack_ref[...] = jnp.zeros_like(xstack_ref)
    for k in range(K):                       # static unrolled loop over the K taps
        d = k - PAD                          # tap offset in [-PAD, PAD]
        xk = xpad_ref[:, pl.ds(k, NL)]       # x[c, p + d]; zeros at the global edges
        if d != 0:
            valid = jnp.logical_and(lpos + d >= 0, lpos + d < L)
            xk = jnp.where(valid, xk, 0.0)
        xstack_ref[pl.ds(k * C_IN, C_IN), pl.ds(0, NL)] = xk

    # ---- Conv1d (no bias): single MXU matmul, f32 accumulation ----
    conv = jnp.dot(w_ref[...], xstack_ref[...],
                   preferred_element_type=jnp.float32)           # (C_OUT, NL_PAD)

    # ---- BatchNorm1d (training mode): one-pass biased batch stats over (N, L) ----
    # Padded columns of `conv` are exactly zero, so full-width sums == valid sums.
    inv_nl = 1.0 / float(NL)
    s1 = jnp.sum(conv, axis=1, keepdims=True)                    # (C_OUT, 1)
    s2 = jnp.sum(conv * conv, axis=1, keepdims=True)
    mean = s1 * inv_nl
    var = jnp.maximum(s2 * inv_nl - mean * mean, 0.0)            # guard f32 cancellation
    scale = gamma_ref[...] * jax.lax.rsqrt(var + BN_EPS)         # (C_OUT, 1), EUP rsqrt
    shift = beta_ref[...] - mean * scale

    # ---- fused affine + ReLU; lane-dense, unmasked store ----
    y = conv * scale + shift
    if USE_RELU:
        y = jnp.maximum(y, 0.0)
    o_ref[...] = y.astype(o_ref.dtype)


def conv_block(x, w, gamma, beta):
    """x: (N, C_IN, L) f32; w: (C_OUT, C_IN, K); gamma/beta: (C_OUT,)."""
    # Layout glue only (transposes/reshapes; no padded copy of x is written to HBM).
    x2 = jnp.transpose(x, (1, 0, 2)).reshape(C_IN, NL)             # (C_IN, N*L)
    w2 = jnp.transpose(w, (0, 2, 1)).reshape(C_OUT, K * C_IN)      # row = k*C_IN + c
    g2 = gamma.reshape(C_OUT, 1).astype(jnp.float32)
    b2 = beta.reshape(C_OUT, 1).astype(jnp.float32)

    vmem = pltpu.MemorySpace.VMEM
    out2 = pl.pallas_call(
        conv_block_kernel,
        out_shape=jax.ShapeDtypeStruct((C_OUT, NL_PAD), jnp.float32),
        in_specs=[
            pl.BlockSpec(memory_space=vmem),   # x2
            pl.BlockSpec(memory_space=vmem),   # w2
            pl.BlockSpec(memory_space=vmem),   # gamma
            pl.BlockSpec(memory_space=vmem),   # beta
        ],
        out_specs=pl.BlockSpec(memory_space=vmem),
        scratch_shapes=[
            pltpu.VMEM((C_IN, NL + 2 * PAD), jnp.float32),   # conv-boundary padded x
            pltpu.VMEM((K * C_IN, NL_PAD), jnp.float32),     # lane-dense im2col stack
        ],
    )(x2, w2, g2, b2)

    # Drop lane padding; back to PyTorch's NCL layout.
    return out2[:, :NL].reshape(C_OUT, N, L).transpose(1, 0, 2)


def reference(x, w, gamma, beta):
    """Pure-JAX reference matching PyTorch ConvBlock.forward (train-mode BN)."""
    out = jax.lax.conv_general_dilated(
        x, w, window_strides=(1,), padding=[(PAD, PAD)],
        dimension_numbers=("NCH", "OIH", "NCH"))
    mean = jnp.mean(out, axis=(0, 2), keepdims=True)
    var = jnp.mean((out - mean) ** 2, axis=(0, 2), keepdims=True)
    out = (out - mean) * jax.lax.rsqrt(var + BN_EPS)
    out = out * gamma.reshape(1, -1, 1) + beta.reshape(1, -1, 1)
    if USE_RELU:
        out = jnp.maximum(out, 0.0)
    return out


if __name__ == "__main__":
    key = jax.random.PRNGKey(0)
    kx, kw = jax.random.split(key)

    # Input
    x = jax.random.normal(kx, (N, C_IN, L), dtype=jnp.float32)

    # Conv weight: kaiming_normal_ (fan_in, gain=sqrt(2)) since relu=True
    fan_in = C_IN * K
    std = math.sqrt(2.0) / math.sqrt(fan_in)
    w = std * jax.random.normal(kw, (C_OUT, C_IN, K), dtype=jnp.float32)

    # BatchNorm affine params: weight=1.0, bias=0.001 (as in init_weights)
    gamma = jnp.full((C_OUT,), 1.0, dtype=jnp.float32)
    beta = jnp.full((C_OUT,), 0.001, dtype=jnp.float32)

    out = conv_block(x, w, gamma, beta)
    out = jax.block_until_ready(out)

    ref = reference(x, w, gamma, beta)
    assert out.shape == (N, C_OUT, L)
    assert jnp.allclose(out, ref, atol=1e-4, rtol=1e-4), "mismatch vs reference"

    print("KERNEL_OK")
</pallas_src>

<mosaic_0001>
module attributes {stable_mosaic.version = 11 : i64} {
  func.func @conv_block_kernel(%arg0: memref<4x32xf32, #tpu.memory_space<vmem>>, %arg1: memref<8x12xf32, #tpu.memory_space<vmem>>, %arg2: memref<8x1xf32, #tpu.memory_space<vmem>>, %arg3: memref<8x1xf32, #tpu.memory_space<vmem>>, %arg4: memref<8x128xf32, #tpu.memory_space<vmem>>, %arg5: memref<4x34xf32, #tpu.memory_space<vmem>>, %arg6: memref<12x128xf32, #tpu.memory_space<vmem>>) attributes {dimension_semantics = [], scalar_prefetch = 0 : i64, scratch_operands = 2 : i64, tpu.core_type = #tpu.core_type<tc>} {
    %cst = arith.constant 0.000000e+00 : f32
    %0 = vector.broadcast %cst : f32 to vector<4x34xf32>
    %c0 = arith.constant 0 : index
    %c0_0 = arith.constant 0 : index
    %1 = vector.load %arg5[%c0, %c0_0] : memref<4x34xf32, #tpu.memory_space<vmem>>, vector<4x34xf32>
    tpu.vector_store %arg5[%c0, %c0_0], %0 {strides = array<i32>} : memref<4x34xf32, #tpu.memory_space<vmem>>, vector<4x34xf32>,
    %c0_1 = arith.constant 0 : index
    %c0_2 = arith.constant 0 : index
    %2 = vector.load %arg0[%c0_1, %c0_2] : memref<4x32xf32, #tpu.memory_space<vmem>>, vector<4x32xf32>
    %c0_3 = arith.constant 0 : index
    %c1 = arith.constant 1 : index
    %3 = vector.load %arg5[%c0_3, %c1] : memref<4x34xf32, #tpu.memory_space<vmem>>, vector<4x32xf32>
    tpu.vector_store %arg5[%c0_3, %c1], %2 {strides = array<i32>} : memref<4x34xf32, #tpu.memory_space<vmem>>, vector<4x32xf32>,
    %4 = tpu.iota {dimensions = array<i32: 1>} : vector<4x32xi32>
    %c16_i32 = arith.constant 16 : i32
    %c0_i32 = arith.constant 0 : i32
    %5 = arith.cmpi eq, %c16_i32, %c0_i32 : i32
    %c1_i32 = arith.constant 1 : i32
    %6 = arith.select %5, %c1_i32, %c16_i32 : i32
    %7 = vector.broadcast %6 : i32 to vector<4x32xi32>
    %8 = arith.remsi %4, %7 : vector<4x32xi32>
    %c0_i32_4 = arith.constant 0 : i32
    %9 = vector.broadcast %c0_i32_4 : i32 to vector<4x32xi32>
    %10 = arith.cmpi ne, %8, %9 : vector<4x32xi32>
    %c0_i32_5 = arith.constant 0 : i32
    %11 = vector.broadcast %c0_i32_5 : i32 to vector<4x32xi32>
    %12 = arith.cmpi slt, %8, %11 : vector<4x32xi32>
    %c0_i32_6 = arith.constant 0 : i32
    %13 = arith.cmpi slt, %6, %c0_i32_6 : i32
    %14 = vector.broadcast %13 : i1 to vector<4x32xi1>
    %15 = vector.broadcast %14 : vector<4x32xi1> to vector<4x32xi1>
    %16 = arith.xori %12, %15 : vector<4x32xi1>
    %17 = arith.andi %16, %10 : vector<4x32xi1>
    %18 = vector.broadcast %6 : i32 to vector<4x32xi32>
    %19 = arith.addi %8, %18 : vector<4x32xi32>
    %20 = arith.select %17, %19, %8 : vector<4x32xi1>, vector<4x32xi32>
    %cst_7 = arith.constant 0.000000e+00 : f32
    %21 = vector.broadcast %cst_7 : f32 to vector<12x128xf32>
    %c0_8 = arith.constant 0 : index
    %c0_9 = arith.constant 0 : index
    %22 = vector.load %arg6[%c0_8, %c0_9] : memref<12x128xf32, #tpu.memory_space<vmem>>, vector<12x128xf32>
    tpu.vector_store %arg6[%c0_8, %c0_9], %21 {strides = array<i32>} : memref<12x128xf32, #tpu.memory_space<vmem>>, vector<12x128xf32>,
    %c0_10 = arith.constant 0 : index
    %c0_11 = arith.constant 0 : index
    %23 = vector.load %arg5[%c0_10, %c0_11] : memref<4x34xf32, #tpu.memory_space<vmem>>, vector<4x32xf32>
    %c-1_i32 = arith.constant -1 : i32
    %24 = vector.broadcast %c-1_i32 : i32 to vector<4x32xi32>
    %25 = arith.addi %20, %24 : vector<4x32xi32>
    %c0_i32_12 = arith.constant 0 : i32
    %26 = vector.broadcast %c0_i32_12 : i32 to vector<4x32xi32>
    %27 = arith.cmpi sge, %25, %26 : vector<4x32xi32>
    %c-1_i32_13 = arith.constant -1 : i32
    %28 = vector.broadcast %c-1_i32_13 : i32 to vector<4x32xi32>
    %29 = arith.addi %20, %28 : vector<4x32xi32>
    %c16_i32_14 = arith.constant 16 : i32
    %30 = vector.broadcast %c16_i32_14 : i32 to vector<4x32xi32>
    %31 = arith.cmpi slt, %29, %30 : vector<4x32xi32>
    %32 = arith.andi %27, %31 : vector<4x32xi1>
    %cst_15 = arith.constant 0.000000e+00 : f32
    %33 = vector.broadcast %cst_15 : f32 to vector<4x32xf32>
    %34 = arith.select %32, %23, %33 : vector<4x32xi1>, vector<4x32xf32>
    %c0_16 = arith.constant 0 : index
    %c0_17 = arith.constant 0 : index
    %35 = vector.load %arg6[%c0_16, %c0_17] : memref<12x128xf32, #tpu.memory_space<vmem>>, vector<4x32xf32>
    tpu.vector_store %arg6[%c0_16, %c0_17], %34 {strides = array<i32>} : memref<12x128xf32, #tpu.memory_space<vmem>>, vector<4x32xf32>,
    %c0_18 = arith.constant 0 : index
    %c1_19 = arith.constant 1 : index
    %36 = vector.load %arg5[%c0_18, %c1_19] : memref<4x34xf32, #tpu.memory_space<vmem>>, vector<4x32xf32>
    %c4 = arith.constant 4 : index
    %c0_20 = arith.constant 0 : index
    %37 = vector.load %arg6[%c4, %c0_20] : memref<12x128xf32, #tpu.memory_space<vmem>>, vector<4x32xf32>
    tpu.vector_store %arg6[%c4, %c0_20], %36 {strides = array<i32>} : memref<12x128xf32, #tpu.memory_space<vmem>>, vector<4x32xf32>,
    %c0_21 = arith.constant 0 : index
    %c2 = arith.constant 2 : index
    %38 = vector.load %arg5[%c0_21, %c2] : memref<4x34xf32, #tpu.memory_space<vmem>>, vector<4x32xf32>
    %c1_i32_22 = arith.constant 1 : i32
    %39 = vector.broadcast %c1_i32_22 : i32 to vector<4x32xi32>
    %40 = arith.addi %20, %39 : vector<4x32xi32>
    %c0_i32_23 = arith.constant 0 : i32
    %41 = vector.broadcast %c0_i32_23 : i32 to vector<4x32xi32>
    %42 = arith.cmpi sge, %40, %41 : vector<4x32xi32>
    %c1_i32_24 = arith.constant 1 : i32
    %43 = vector.broadcast %c1_i32_24 : i32 to vector<4x32xi32>
    %44 = arith.addi %20, %43 : vector<4x32xi32>
    %c16_i32_25 = arith.constant 16 : i32
    %45 = vector.broadcast %c16_i32_25 : i32 to vector<4x32xi32>
    %46 = arith.cmpi slt, %44, %45 : vector<4x32xi32>
    %47 = arith.andi %42, %46 : vector<4x32xi1>
    %cst_26 = arith.constant 0.000000e+00 : f32
    %48 = vector.broadcast %cst_26 : f32 to vector<4x32xf32>
    %49 = arith.select %47, %38, %48 : vector<4x32xi1>, vector<4x32xf32>
    %c8 = arith.constant 8 : index
    %c0_27 = arith.constant 0 : index
    %50 = vector.load %arg6[%c8, %c0_27] : memref<12x128xf32, #tpu.memory_space<vmem>>, vector<4x32xf32>
    tpu.vector_store %arg6[%c8, %c0_27], %49 {strides = array<i32>} : memref<12x128xf32, #tpu.memory_space<vmem>>, vector<4x32xf32>,
    %c0_28 = arith.constant 0 : index
    %c0_29 = arith.constant 0 : index
    %51 = vector.load %arg1[%c0_28, %c0_29] : memref<8x12xf32, #tpu.memory_space<vmem>>, vector<8x12xf32>
    %c0_30 = arith.constant 0 : index
    %c0_31 = arith.constant 0 : index
    %52 = vector.load %arg6[%c0_30, %c0_31] : memref<12x128xf32, #tpu.memory_space<vmem>>, vector<12x128xf32>
    %cst_32 = arith.constant dense<0.000000e+00> : vector<8x128xf32>
    %53 = tpu.matmul %51, %52, %cst_32 {dimension_numbers = #tpu.dot_dimension_numbers<[1], [0], [0], [1], [0, 0, 1, 1], [], []>} : vector<8x12xf32>, vector<12x128xf32>, vector<8x128xf32> -> vector<8x128xf32>
    %cst_33 = arith.constant dense<0.000000e+00> : vector<8xf32>
    %54 = vector.multi_reduction <add>, %53, %cst_33 [1] : vector<8x128xf32> to vector<8xf32>
    %55 = vector.shape_cast %54 : vector<8xf32> to vector<8x1xf32>
    %56 = arith.mulf %53, %53 : vector<8x128xf32>
    %cst_34 = arith.constant dense<0.000000e+00> : vector<8xf32>
    %57 = vector.multi_reduction <add>, %56, %cst_34 [1] : vector<8x128xf32> to vector<8xf32>
    %58 = vector.shape_cast %57 : vector<8xf32> to vector<8x1xf32>
    %cst_35 = arith.constant 3.125000e-02 : f32
    %59 = vector.broadcast %cst_35 : f32 to vector<8x1xf32>
    %60 = arith.mulf %55, %59 : vector<8x1xf32>
    %cst_36 = arith.constant 3.125000e-02 : f32
    %61 = vector.broadcast %cst_36 : f32 to vector<8x1xf32>
    %62 = arith.mulf %58, %61 : vector<8x1xf32>
    %63 = arith.mulf %60, %60 : vector<8x1xf32>
    %64 = arith.subf %62, %63 : vector<8x1xf32>
    %cst_37 = arith.constant 0.000000e+00 : f32
    %65 = vector.broadcast %cst_37 : f32 to vector<8x1xf32>
    %66 = arith.maximumf %64, %65 : vector<8x1xf32>
    %c0_38 = arith.constant 0 : index
    %c0_39 = arith.constant 0 : index
    %67 = vector.load %arg2[%c0_38, %c0_39] : memref<8x1xf32, #tpu.memory_space<vmem>>, vector<8x1xf32>
    %cst_40 = arith.constant 9.99999974E-6 : f32
    %68 = vector.broadcast %cst_40 : f32 to vector<8x1xf32>
    %69 = arith.addf %66, %68 : vector<8x1xf32>
    %70 = math.rsqrt %69 : vector<8x1xf32>
    %71 = arith.mulf %67, %70 : vector<8x1xf32>
    %c0_41 = arith.constant 0 : index
    %c0_42 = arith.constant 0 : index
    %72 = vector.load %arg3[%c0_41, %c0_42] : memref<8x1xf32, #tpu.memory_space<vmem>>, vector<8x1xf32>
    %73 = arith.mulf %60, %71 : vector<8x1xf32>
    %74 = arith.subf %72, %73 : vector<8x1xf32>
    %75 = vector.broadcast %71 : vector<8x1xf32> to vector<8x128xf32>
    %76 = arith.mulf %53, %75 : vector<8x128xf32>
    %77 = vector.broadcast %74 : vector<8x1xf32> to vector<8x128xf32>
    %78 = arith.addf %76, %77 : vector<8x128xf32>
    %cst_43 = arith.constant 0.000000e+00 : f32
    %79 = vector.broadcast %cst_43 : f32 to vector<8x128xf32>
    %80 = arith.maximumf %78, %79 : vector<8x128xf32>
    %c0_44 = arith.constant 0 : index
    %c0_45 = arith.constant 0 : index
    %81 = vector.load %arg4[%c0_44, %c0_45] : memref<8x128xf32, #tpu.memory_space<vmem>>, vector<8x128xf32>
    tpu.vector_store %arg4[%c0_44, %c0_45], %80 {strides = array<i32>} : memref<8x128xf32, #tpu.memory_space<vmem>>, vector<8x128xf32>,
    return
  }
}

</mosaic_0001>

<bundles_post_ra>
// kernel: tpu_custom_call.1
= control target key start
LH: loop header
LB: loop body
LE: loop exit
PB: predicated region body
PF: predicated region fallthrough
CT: control target
= control target key end

     0   :  { %s193_s17 = smov 1   ;;  %s242_s0 = inlined_call_operand.vmem [shape: f32[4,32], index: 0, kind: input, shape index: {}]   ;;  %s243_s1 = inlined_call_operand.vmem [shape: f32[8,12], index: 1, kind: input, shape index: {}]   ;;  %s244_s2 = inlined_call_operand.vmem [shape: f32[8,1], index: 2, kind: input, shape index: {}]   ;;  %s245_s3 = inlined_call_operand.vmem [shape: f32[8,1], index: 3, kind: input, shape index: {}]   ;;  %s246_s4 = inlined_call_operand.hbm [shape: f32[8,128], index: 4, kind: output, shape index: {}]  }
   0x1   :  { %v20_v0 = vld [vmem:[%s242_s0] sm:$0xf] }
   0x2   :  { %22 = vrot.lane.b32.xlu0 %v20_v0, %s193_s17 }
   0x3   :  { %9 = vsyncpa [#allocation5], 0  ;;  %vm18_vm0 = vcmask 273408   ;;  %v194_v1 = vmov 0.0   ;;  %v27_v2 = vlaneseq  ;;  %vm25_vm1 = vcmask 265224   ;;  %s195_s0 = smov 126  }
   0x4   :  { %19 = vst.msk [vmem:[#allocation2] sm:$0xf] %vm18_vm0, %v194_v1  ;;  %vm49_vm3 = vcmask 257024   ;;  %s196_s18 = smov 127   ;;  %vm75_vm5 = vcmask 1043456   ;;  %v68_v16 = vld [vmem:[%s243_s1] sm:$0xff] }
   0x5   :  { %41 = vst [vmem:[#allocation3] sm:$0xff] %v194_v1  ;;  %v28_v3 = vand.u32 127, %v27_v2  ;;  %vm71_vm6 = vcmask 97280   ;;  %v197_v20 = vmov 0   ;;  %v109_v34 = vld [vmem:[%s244_s2] sm:$0xff]  ;;  %s198_s24 = smov [#allocation4]  }
   0x6   :  { %42 = vst [vmem:[#allocation3 + $0x8] sm:$0xf] %v194_v1  ;;  %163 = vset.pattern.permute.xlu2 %v197_v20  ;;  %164 = vset.pattern.permute.xlu0 %v197_v20  ;;  %v122_v38 = vld [vmem:[%s245_s3] sm:$0xff]  ;;  %s144_s25 = sshll.u32 %s198_s24, 4  ;;  %s146_s2 = sshll.u32 %s246_s4, 4  ;;  %s145_s25 = int_to_ptr.vmem [resolvable:$true] %s144_s25  ;;  %s147_s2 = int_to_ptr.hbm [resolvable:$true] %s146_s2 }
   0x7   :  { %v33_v4 = vand.u32 15, %v28_v3 }
   0x9   :  { %v44_v6 = vadd.s32 4294967295, %v33_v4  ;;  %v58_v11 = vadd.s32 1, %v33_v4 }
   0xb   :  { %vm45_vm2 = vcmp.ge.s32.totalorder %v44_v6, 0  ;;  %vm60_vm4 = vcmp.lt.s32.totalorder %v58_v11, 16 }
  0x74   :  { %v23_v5 = vpop.permute.xlu0 %22 }
  0x75   :  { %26 = vst.msk [vmem:[#allocation2] sm:$0xf] %vm25_vm1, %v23_v5 }
  0x7c   :  { %v57_v7 = vld [vmem:[#allocation2] sm:$0xf] }
  0x7d   :  { %v51_v8 = vld [vmem:[#allocation2] sm:$0xf]  ;;  %63 = vrot.lane.b32.xlu0 %v57_v7, %s195_s0 }
  0x7e   :  { %v43_v9 = vld [vmem:[#allocation2] sm:$0xf]  ;;  %53 = vrot.lane.b32.xlu1 %v51_v8, %s196_s18 }
  0x7f   :  { %v48_v10 = vsel %vm45_vm2, %v43_v9, 0.0 }
  0x80   :  { %50 = vst.msk [vmem:[#allocation3] sm:$0xf] %vm49_vm3, %v48_v10 }
  0xef   :  { %v64_v12 = vpop.permute.xlu0 %63 }
  0xf0   :  { %v54_v13 = vpop.permute.xlu1 %53  ;;  %v66_v14 = vsel %vm60_vm4, %v64_v12, 0.0 }
  0xf1   :  { %56 = vst.msk [vmem:[#allocation3 + $0x4] sm:$0xf] %vm49_vm3, %v54_v13 }
  0xf2   :  { %67 = vst.msk [vmem:[#allocation3 + $0x8] sm:$0xf] %vm49_vm3, %v66_v14 }
  0xf8   :  { %v69_v17 = vld [vmem:[#allocation3] sm:$0xff] }
  0xf9   :  { %v70_v15 = vld [vmem:[#allocation3 + $0x8] sm:$0xf] }
  0xfa   :  { %155 = vmatpush.msk.msra.mxu0 %vm75_vm5, %v70_v15 }
  0xfc   :  { %94 = vmatpush.msra.mxu0 %v69_v17 }
  0xfd   :  { %156 = vmatmul.msk.f32.vlgmr.msra.gmra.mxu0 %vm71_vm6, %v68_v16 }
 0x17a   :  { %v96_v18 = vpop.f32.mrf.mxu0 }
 0x17b   :  { %99 = vadd.xlane.f32.xlu1 %v96_v18  ;;  %v101_v19 = vmul.f32 %v96_v18, %v96_v18 }
 0x17d   :  { %102 = vadd.xlane.f32.xlu2 %v101_v19 }
 0x1ee   :  { %v100_v21 = vpop.xlane.xlu1 %99 }
 0x1ef   :  { %v104_v22 = vmul.f32 0.03125, %v100_v21 }
 0x1f0   :  { %v103_v23 = vpop.xlane.xlu2 %102 }
 0x1f1   :  { %v106_v24 = vmul.f32 %v104_v22, %v104_v22  ;;  %v105_v25 = vmul.f32 0.03125, %v103_v23 }
 0x1f3   :  { %v107_v26 = vsub.f32 %v105_v25, %v106_v24 }
 0x1f5   :  { %v108_v27 = vmax.f32 %v107_v26, 0.0 }
 0x1f7   :  { %v110_v28 = vadd.f32 1e-05, %v108_v27 }
 0x1f9   :  { %165 = vrsqrt.f32 %v110_v28  ;;  %vm117_vm8 = vweird.f32 %v110_v28 }
 0x1ff   :  { %v166_v29 = vpop.eup %165 }
 0x200   :  { %v112_v30 = vmul.f32 %v166_v29, %v110_v28  ;;  %vm118_vm7 = vweird.f32 %v166_v29 }
 0x201   :  { %vm119_vm9 = vmor %vm117_vm8, %vm118_vm7 }
 0x202   :  { %v113_v31 = vmul.f32 %v166_v29, %v112_v30 }
 0x204   :  { %v114_v32 = vmul.f32 0.5, %v113_v31 }
 0x206   :  { %v115_v33 = vsub.f32 1.5, %v114_v32 }
 0x208   :  { %v116_v35 = vmul.f32 %v166_v29, %v115_v33 }
 0x20a   :  { %v120_v36 = vsel %vm119_vm9, %v166_v29, %v116_v35 }
 0x20b   :  { %v121_v37 = vmul.f32 %v120_v36, %v109_v34 }
 0x20d   :  { %127 = vperm.xlu2 %163, %v121_v37   ;;  %v123_v39 = vmul.f32 %v121_v37, %v104_v22 }
 0x20f   :  { %v124_v40 = vsub.f32 %v122_v38, %v123_v39 }
 0x211   :  { %133 = vperm.xlu0 %164, %v124_v40  }
 0x267   :  { %v128_v41 = vpop.permute.xlu2 %127 }
 0x268   :  { %v130_v42 = vmul.f32 %v128_v41, %v96_v18 }
 0x283   :  { %v134_v43 = vpop.permute.xlu0 %133 }
 0x284   :  { %v136_v44 = vadd.f32 %v134_v43, %v130_v42 }
 0x286   :  { %v137_v45 = vmax.f32 %v136_v44, 0.0 }
 0x288   :  { %138 = vst [vmem:[#allocation4] sm:$0xff] %v137_v45 }
 0x289   :  { %149 = dma.vmem_to_hbm [thread:$0]  %s145_s25, 128, %s147_s2, [#allocation5]  }
 0x28a   :  { %191 = dma.done.wait [#allocation5], 128  }
 0x28b   :  { %192 = vsyncadd [#allocation5], 4294967168 }
 0x28c   :  { %154 = vsyncpa [#allocation5], 1 }

</bundles_post_ra>
